<compile_context>
chip_gen: v5e
topology: v5e:2x2
jax: 0.10.0
libtpu: 0.0.40
codegen_flags: <defaults>
</compile_context>

<pallas_src>
import functools
import math

import jax
import jax.numpy as jnp
from jax import lax
from jax.experimental import pallas as pl
from jax.experimental.pallas import tpu as pltpu


def _round_up(n: int, m: int) -> int:
    return ((n + m - 1) // m) * m


# --------------------------------- kernel -----------------------------------

def _noisy_mlp_kernel(x_ref, w1_ref, w2_ref, vec_ref, o_ref, *,
                      ni_p, dim_p, no_p, precision):
    """Fused forward pass.

    x_ref  : (Bp, ni_p)     zero-padded activations
    w1_ref : (ni_p, dim_p)  layer-1 weight_mu, pre-transposed to (in, out)
    w2_ref : (dim_p, no_p)  layer-2 weight_mu, pre-transposed to (in, out)
    vec_ref: (8, Vmax)      packed small vectors:
       row 0: eps1_in                      (len ni,  zero padded)
       row 1: sigma1_w * eps1_out          (len dim, zero padded)
       row 2: b1_mu + sigma1_b * eps1_out  (len dim, zero padded)
       row 3: eps2_in                      (len dim, zero padded)
       row 4: sigma2_w * eps2_out          (len no,  zero padded)
       row 5: b2_mu + sigma2_b * eps2_out  (len no,  zero padded)
    """
    x = x_ref[...]
    vecs = vec_ref[...]

    eps1_in = vecs[0:1, :ni_p]     # (1, ni_p)
    a1_out  = vecs[1:2, :dim_p]    # (1, dim_p)
    b1_eff  = vecs[2:3, :dim_p]    # (1, dim_p)
    eps2_in = vecs[3:4, :dim_p]    # (1, dim_p)
    a2_out  = vecs[4:5, :no_p]     # (1, no_p)
    b2_eff  = vecs[5:6, :no_p]     # (1, no_p)

    # ---- layer 1: NoisyLinear(ni -> dim) + ReLU ----
    h = jnp.dot(x, w1_ref[...], precision=precision,
                preferred_element_type=jnp.float32)           # MXU, (Bp, dim_p)
    s1 = jnp.sum(x * eps1_in, axis=-1, keepdims=True)         # (Bp, 1) rank-1 noise
    h = jnp.maximum(h + s1 * a1_out + b1_eff, 0.0)

    # ---- layer 2: NoisyLinear(dim -> no) + ReLU ----
    y = jnp.dot(h, w2_ref[...], precision=precision,
                preferred_element_type=jnp.float32)           # (Bp, no_p)
    s2 = jnp.sum(h * eps2_in, axis=-1, keepdims=True)
    y = jnp.maximum(y + s2 * a2_out + b2_eff, 0.0)

    o_ref[...] = y.astype(o_ref.dtype)


# -------------------------- parameter init & packing ------------------------

def _scale_noise(key, size):
    x = jax.random.normal(key, (size,), dtype=jnp.float32)
    return jnp.sign(x) * jnp.sqrt(jnp.abs(x))


def init_noisy_linear(key, n_in, n_out, std):
    """Mirrors NoisyLinear.reset_parameters() + reset_noise()."""
    k_wmu, k_bmu, k_ein, k_eout = jax.random.split(key, 4)
    mu_range = 1.0 / math.sqrt(n_in)
    weight_mu = jax.random.uniform(k_wmu, (n_out, n_in), dtype=jnp.float32,
                                   minval=-mu_range, maxval=mu_range)
    bias_mu = jax.random.uniform(k_bmu, (n_out,), dtype=jnp.float32,
                                 minval=-mu_range, maxval=mu_range)
    return dict(
        w_mu=weight_mu,
        b_mu=bias_mu,
        sig_w=std / math.sqrt(n_in),    # weight_sigma constant fill
        sig_b=std / math.sqrt(n_out),   # bias_sigma constant fill
        eps_in=_scale_noise(k_ein, n_in),
        eps_out=_scale_noise(k_eout, n_out),
    )


def init_noisy_model(key, ni, no, dim, std):
    k1, k2 = jax.random.split(key)
    return dict(l1=init_noisy_linear(k1, ni, dim, std),
                l2=init_noisy_linear(k2, dim, no, std))


def pack_noisy_model(raw):
    """One-time packing (per reset_noise) into the kernel's lane-dense layout."""
    l1, l2 = raw["l1"], raw["l2"]
    dim, ni = l1["w_mu"].shape
    no = l2["w_mu"].shape[0]
    ni_p, dim_p, no_p = (_round_up(d, 128) for d in (ni, dim, no))
    vmax = max(ni_p, dim_p, no_p)

    # weights stored pre-transposed (in, out), zero padded -> no in-kernel .T
    w1_t = jnp.pad(l1["w_mu"], ((0, dim_p - dim), (0, ni_p - ni))).T   # (ni_p, dim_p)
    w2_t = jnp.pad(l2["w_mu"], ((0, no_p - no), (0, dim_p - dim))).T   # (dim_p, no_p)

    def row(v):
        return jnp.pad(v.astype(jnp.float32), (0, vmax - v.shape[0]))

    vec = jnp.stack([
        row(l1["eps_in"]),
        row(l1["sig_w"] * l1["eps_out"]),
        row(l1["b_mu"] + l1["sig_b"] * l1["eps_out"]),
        row(l2["eps_in"]),
        row(l2["sig_w"] * l2["eps_out"]),
        row(l2["b_mu"] + l2["sig_b"] * l2["eps_out"]),
        jnp.zeros((vmax,), jnp.float32),
        jnp.zeros((vmax,), jnp.float32),
    ], axis=0)                                                          # (8, vmax)

    return dict(w1_t=w1_t, w2_t=w2_t, vec=vec,
                dims=(ni, dim, no), padded=(ni_p, dim_p, no_p))


# --------------------------------- forward ----------------------------------

def noisy_model_forward(x, packed, *, precision=lax.Precision.HIGHEST):
    B, ni = x.shape
    ni_, dim, no = packed["dims"]
    ni_p, dim_p, no_p = packed["padded"]
    assert ni == ni_

    Bp = _round_up(B, 8)
    x_p = jnp.pad(x, ((0, Bp - B), (0, ni_p - ni)))     # lane/sublane dense slab

    kernel = functools.partial(_noisy_mlp_kernel, ni_p=ni_p, dim_p=dim_p,
                               no_p=no_p, precision=precision)

    def full_spec(a):
        nd = a.ndim
        return pl.BlockSpec(a.shape, lambda *_, n=nd: (0,) * n)

    args = (x_p, packed["w1_t"], packed["w2_t"], packed["vec"])

    y_p = pl.pallas_call(
        kernel,
        out_shape=jax.ShapeDtypeStruct((Bp, no_p), jnp.float32),
        in_specs=[full_spec(a) for a in args],
        out_specs=pl.BlockSpec((Bp, no_p), lambda: (0, 0)),
        compiler_params=pltpu.CompilerParams(vmem_limit_bytes=32 * 1024 * 1024),
    )(*args)

    return y_p[:B, :no]


# -------------------------------- reference ---------------------------------

def noisy_model_ref(x, raw):
    """Pure-JAX equivalent of the PyTorch NoisyModel.forward (full matrices)."""
    def layer(h, p):
        w = p["w_mu"] + p["sig_w"] * jnp.outer(p["eps_out"], p["eps_in"])
        b = p["b_mu"] + p["sig_b"] * p["eps_out"]
        return jnp.maximum(
            jnp.dot(h, w.T, precision=lax.Precision.HIGHEST) + b, 0.0)
    return layer(layer(x, raw["l1"]), raw["l2"])


# ----------------------------------- main ------------------------------------

if __name__ == "__main__":
    B, ni, dim, no, std = 8, 32, 64, 16, 0.5

    key = jax.random.PRNGKey(0)
    k_x, k_p = jax.random.split(key)
    x = jax.random.normal(k_x, (B, ni), dtype=jnp.float32)

    raw = init_noisy_model(k_p, ni=ni, no=no, dim=dim, std=std)
    packed = pack_noisy_model(raw)          # once per reset_noise()

    y = noisy_model_forward(x, packed)
    y = jax.block_until_ready(y)

    y_ref = noisy_model_ref(x, raw)
    assert y.shape == (B, no)
    max_err = float(jnp.max(jnp.abs(y - y_ref)))
    assert jnp.allclose(y, y_ref, atol=1e-4, rtol=1e-4), f"mismatch, max_err={max_err}"

    print("KERNEL_OK")
</pallas_src>

<mosaic_0001>
module attributes {stable_mosaic.version = 11 : i64} {
  func.func @_noisy_mlp_kernel(%arg0: memref<8x128xf32, #tpu.memory_space<vmem>>, %arg1: memref<128x128xf32, #tpu.memory_space<vmem>>, %arg2: memref<128x128xf32, #tpu.memory_space<vmem>>, %arg3: memref<8x128xf32, #tpu.memory_space<vmem>>, %arg4: memref<8x128xf32, #tpu.memory_space<vmem>>) attributes {dimension_semantics = [], scalar_prefetch = 0 : i64, scratch_operands = 0 : i64, tpu.core_type = #tpu.core_type<tc>} {
    %c0 = arith.constant 0 : index
    %c0_0 = arith.constant 0 : index
    %0 = vector.load %arg0[%c0, %c0_0] : memref<8x128xf32, #tpu.memory_space<vmem>>, vector<8x128xf32>
    %c0_1 = arith.constant 0 : index
    %c0_2 = arith.constant 0 : index
    %1 = vector.load %arg3[%c0_1, %c0_2] : memref<8x128xf32, #tpu.memory_space<vmem>>, vector<8x128xf32>
    %2 = vector.extract_strided_slice %1 {offsets = [0, 0], sizes = [1, 128], strides = [1, 1]} : vector<8x128xf32> to vector<1x128xf32>
    %3 = vector.extract_strided_slice %1 {offsets = [1, 0], sizes = [1, 128], strides = [1, 1]} : vector<8x128xf32> to vector<1x128xf32>
    %4 = vector.extract_strided_slice %1 {offsets = [2, 0], sizes = [1, 128], strides = [1, 1]} : vector<8x128xf32> to vector<1x128xf32>
    %5 = vector.extract_strided_slice %1 {offsets = [3, 0], sizes = [1, 128], strides = [1, 1]} : vector<8x128xf32> to vector<1x128xf32>
    %6 = vector.extract_strided_slice %1 {offsets = [4, 0], sizes = [1, 128], strides = [1, 1]} : vector<8x128xf32> to vector<1x128xf32>
    %7 = vector.extract_strided_slice %1 {offsets = [5, 0], sizes = [1, 128], strides = [1, 1]} : vector<8x128xf32> to vector<1x128xf32>
    %c0_3 = arith.constant 0 : index
    %c0_4 = arith.constant 0 : index
    %8 = vector.load %arg1[%c0_3, %c0_4] : memref<128x128xf32, #tpu.memory_space<vmem>>, vector<128x128xf32>
    %cst = arith.constant dense<0.000000e+00> : vector<8x128xf32>
    %9 = tpu.matmul %0, %8, %cst {dimension_numbers = #tpu.dot_dimension_numbers<[1], [0], [0], [1], [0, 0, 1, 1], [], []>, precision = #tpu.contract_precision<fp32>} : vector<8x128xf32>, vector<128x128xf32>, vector<8x128xf32> -> vector<8x128xf32>
    %10 = vector.broadcast %2 : vector<1x128xf32> to vector<8x128xf32>
    %11 = arith.mulf %0, %10 : vector<8x128xf32>
    %cst_5 = arith.constant dense<0.000000e+00> : vector<8xf32>
    %12 = vector.multi_reduction <add>, %11, %cst_5 [1] : vector<8x128xf32> to vector<8xf32>
    %13 = vector.shape_cast %12 : vector<8xf32> to vector<8x1xf32>
    %14 = vector.broadcast %13 : vector<8x1xf32> to vector<8x128xf32>
    %15 = vector.broadcast %3 : vector<1x128xf32> to vector<8x128xf32>
    %16 = arith.mulf %14, %15 : vector<8x128xf32>
    %17 = arith.addf %9, %16 : vector<8x128xf32>
    %18 = vector.broadcast %4 : vector<1x128xf32> to vector<8x128xf32>
    %19 = arith.addf %17, %18 : vector<8x128xf32>
    %cst_6 = arith.constant 0.000000e+00 : f32
    %20 = vector.broadcast %cst_6 : f32 to vector<8x128xf32>
    %21 = arith.maximumf %19, %20 : vector<8x128xf32>
    %c0_7 = arith.constant 0 : index
    %c0_8 = arith.constant 0 : index
    %22 = vector.load %arg2[%c0_7, %c0_8] : memref<128x128xf32, #tpu.memory_space<vmem>>, vector<128x128xf32>
    %cst_9 = arith.constant dense<0.000000e+00> : vector<8x128xf32>
    %23 = tpu.matmul %21, %22, %cst_9 {dimension_numbers = #tpu.dot_dimension_numbers<[1], [0], [0], [1], [0, 0, 1, 1], [], []>, precision = #tpu.contract_precision<fp32>} : vector<8x128xf32>, vector<128x128xf32>, vector<8x128xf32> -> vector<8x128xf32>
    %24 = vector.broadcast %5 : vector<1x128xf32> to vector<8x128xf32>
    %25 = arith.mulf %21, %24 : vector<8x128xf32>
    %cst_10 = arith.constant dense<0.000000e+00> : vector<8xf32>
    %26 = vector.multi_reduction <add>, %25, %cst_10 [1] : vector<8x128xf32> to vector<8xf32>
    %27 = vector.shape_cast %26 : vector<8xf32> to vector<8x1xf32>
    %28 = vector.broadcast %27 : vector<8x1xf32> to vector<8x128xf32>
    %29 = vector.broadcast %6 : vector<1x128xf32> to vector<8x128xf32>
    %30 = arith.mulf %28, %29 : vector<8x128xf32>
    %31 = arith.addf %23, %30 : vector<8x128xf32>
    %32 = vector.broadcast %7 : vector<1x128xf32> to vector<8x128xf32>
    %33 = arith.addf %31, %32 : vector<8x128xf32>
    %cst_11 = arith.constant 0.000000e+00 : f32
    %34 = vector.broadcast %cst_11 : f32 to vector<8x128xf32>
    %35 = arith.maximumf %33, %34 : vector<8x128xf32>
    %c0_12 = arith.constant 0 : index
    %c0_13 = arith.constant 0 : index
    %36 = vector.load %arg4[%c0_12, %c0_13] : memref<8x128xf32, #tpu.memory_space<vmem>>, vector<8x128xf32>
    tpu.vector_store %arg4[%c0_12, %c0_13], %35 {strides = array<i32>} : memref<8x128xf32, #tpu.memory_space<vmem>>, vector<8x128xf32>,
    return
  }
}

</mosaic_0001>

<bundles_post_ra>
// kernel: tpu_custom_call.1
= control target key start
LH: loop header
LB: loop body
LE: loop exit
PB: predicated region body
PF: predicated region fallthrough
CT: control target
= control target key end

     0   :  { %9 = vsyncpa [#allocation3], 0  ;;  %s1512_s0 = inlined_call_operand.hbm [shape: f32[8,128], index: 0, kind: input, shape index: {}]   ;;  %s1513_s1 = inlined_call_operand.hbm [shape: f32[128,128], index: 1, kind: input, shape index: {}]   ;;  %s1514_s2 = inlined_call_operand.hbm [shape: f32[128,128], index: 2, kind: input, shape index: {}]   ;;  %s1515_s3 = inlined_call_operand.hbm [shape: f32[8,128], index: 3, kind: input, shape index: {}]   ;;  %s1516_s4 = inlined_call_operand.hbm [shape: f32[8,128], index: 4, kind: output, shape index: {}]  }
   0x1   :  { %10 = vsyncpa [#allocation6], 0 }
   0x2   :  { %11 = vsyncpa [#allocation9], 0  ;;  %s28_s17 = sshll.u32 %s1513_s1, 4  ;;  %s29_s17 = int_to_ptr.hbm [resolvable:$true] %s28_s17 }
   0x3   :  { %12 = vsyncpa [#allocation4], 0  ;;  %s966_s18 = smov [#allocation5]   ;;  %s18_s22 = sshll.u32 %s1512_s0, 4  ;;  %s19_s22 = int_to_ptr.hbm [resolvable:$true] %s18_s22 }
   0x4   :  { %s30_s19 = sshll.u32 %s966_s18, 4  ;;  %s967_s23 = smov 128   ;;  %s31_s19 = int_to_ptr.vmem [resolvable:$true] %s30_s19 }
   0x5   :  { %s968_s24 = smov 8   ;;  %s969_s25 = smov [#allocation2]  }
   0x6   :  { %36 = dma.hbm_to_vmem [thread:$0]  %s29_s17, 2048, %s31_s19, [#allocation6], %s967_s23, %s967_s23, %s968_s24  }
   0x7   :  { %s20_s26 = sshll.u32 %s969_s25, 4  ;;  %s41_s29 = sshll.u32 %s1514_s2, 4  ;;  %s21_s26 = int_to_ptr.vmem [resolvable:$true] %s20_s26  ;;  %s42_s29 = int_to_ptr.hbm [resolvable:$true] %s41_s29 }
   0x8   :  { %23 = dma.hbm_to_vmem [thread:$0]  %s19_s22, 128, %s21_s26, [#allocation3]  }
   0x9   :  { %s55_s5 = sshll.u32 %s1515_s3, 4  ;;  %s970_s6 = smov [#allocation7]   ;;  %s56_s5 = int_to_ptr.hbm [resolvable:$true] %s55_s5 }
   0xa   :  { %s43_s7 = sshll.u32 %s970_s6, 4  ;;  %s971_s0 = smov [#allocation8]   ;;  %s44_s7 = int_to_ptr.vmem [resolvable:$true] %s43_s7 }
   0xb   :  { %49 = dma.hbm_to_vmem [thread:$0]  %s42_s29, 2048, %s44_s7, [#allocation6], %s967_s23, %s967_s23, %s968_s24  }
   0xc   :  { %s57_s8 = sshll.u32 %s971_s0, 4  ;;  %s58_s8 = int_to_ptr.vmem [resolvable:$true] %s57_s8 }
   0xd   :  { %60 = dma.hbm_to_vmem [thread:$0]  %s56_s5, 128, %s58_s8, [#allocation9]  }
   0xe   :  { %958 = dma.done.wait [#allocation3], 128  }
   0xf   :  { %959 = vsyncadd [#allocation3], 4294967168 }
  0x10   :  { %960 = dma.done.wait [#allocation6], 4096  }
  0x11   :  { %961 = vsyncadd [#allocation6], 4294963200 }
  0x12   :  { %962 = dma.done.wait [#allocation9], 128  }
  0x13   :  { %963 = vsyncadd [#allocation9], 4294967168  ;;  %v94_v0 = vld [vmem:[#allocation5 + $0x78] sm:$0xff]  ;;  %v93_v1 = vld [vmem:[#allocation5 + $0x70] sm:$0xff]  ;;  %s972_s2 = smov [#allocation10]   ;;  %s819_s11 = sshll.u32 %s1516_s4, 4  ;;  %s820_s11 = int_to_ptr.hbm [resolvable:$true] %s819_s11 }
  0x14   :  { %v92_v2 = vld [vmem:[#allocation5 + $0x68] sm:$0xff]  ;;  %v1010_v3 = vand.u32 4294901760, %v94_v0  ;;  %v1012_v4 = vand.u32 4294901760, %v93_v1  ;;  %v91_v6 = vld [vmem:[#allocation5 + $0x60] sm:$0xff]  ;;  %v90_v7 = vld [vmem:[#allocation5 + $0x58] sm:$0xff]  ;;  %s817_s3 = sshll.u32 %s972_s2, 4  ;;  %s818_s3 = int_to_ptr.vmem [resolvable:$true] %s817_s3 }
  0x15   :  { %v1014_v5 = vand.u32 4294901760, %v92_v2  ;;  %v89_v8 = vld [vmem:[#allocation5 + $0x50] sm:$0xff]  ;;  %v1016_v9 = vand.u32 4294901760, %v91_v6  ;;  %v1018_v10 = vand.u32 4294901760, %v90_v7  ;;  %v88_v12 = vld [vmem:[#allocation5 + $0x48] sm:$0xff]  ;;  %v87_v13 = vld [vmem:[#allocation5 + $0x40] sm:$0xff] }
  0x16   :  { %v1020_v11 = vand.u32 4294901760, %v89_v8  ;;  %102 = vmatpush.msra.mxu0 %v1010_v3  ;;  %v1024_v14 = vsub.f32 %v94_v0, %v1010_v3  ;;  %v1027_v15 = vsub.f32 %v93_v1, %v1012_v4  ;;  %v1032_v17 = vand.u32 4294901760, %v88_v12  ;;  %298 = vmatpush.msra.mxu3 %v1010_v3  ;;  %v86_v21 = vld [vmem:[#allocation5 + $0x38] sm:$0xff]  ;;  %v85_v34 = vld [vmem:[#allocation5 + $0x30] sm:$0xff]  ;;  %v84_v35 = vld [vmem:[#allocation5 + $0x28] sm:$0xff] }
  0x17   :  { %v1030_v16 = vsub.f32 %v92_v2, %v1014_v5  ;;  %v1036_v18 = vsub.f32 %v91_v6, %v1016_v9  ;;  %v1039_v19 = vsub.f32 %v90_v7, %v1018_v10  ;;  %v1041_v20 = vand.u32 4294901760, %v87_v13  ;;  %v83_v42 = vld [vmem:[#allocation5 + $0x20] sm:$0xff]  ;;  %v82_v47 = vld [vmem:[#allocation5 + $0x18] sm:$0xff]  ;;  %v81_v53 = vld [vmem:[#allocation5 + $0x10] sm:$0xff] }
  0x18   :  { %104 = vmatpush.msra.mxu0 %v1012_v4  ;;  %v144_v22 = vand.u32 4294901760, %v1024_v14  ;;  %v150_v23 = vand.u32 4294901760, %v1027_v15  ;;  %v1048_v25 = vsub.f32 %v89_v8, %v1020_v11  ;;  %245 = vmatpush.msra.mxu2 %v1024_v14  ;;  %v1054_v28 = vsub.f32 %v88_v12, %v1032_v17  ;;  %v80_v61 = vld [vmem:[#allocation5 + $0x8] sm:$0xff]  ;;  %v79_v2 = vld [vmem:[#allocation5] sm:$0xff] }
  0x19   :  { %v156_v24 = vand.u32 4294901760, %v1030_v16  ;;  %v162_v26 = vand.u32 4294901760, %v1036_v18  ;;  %v168_v27 = vand.u32 4294901760, %v1039_v19  ;;  %300 = vmatpush.msra.mxu3 %v1012_v4  ;;  %v1067_v32 = vand.u32 4294901760, %v86_v21 }
  0x1a   :  { %v145_v29 = vsub.f32 %v1024_v14, %v144_v22  ;;  %106 = vmatpush.msra.mxu0 %v1014_v5  ;;  %v151_v30 = vsub.f32 %v1027_v15, %v150_v23  ;;  %248 = vmatpush.msra.mxu2 %v1027_v15  ;;  %v1071_v33 = vsub.f32 %v87_v13, %v1041_v20  ;;  %v174_v39 = vand.u32 4294901760, %v1048_v25  ;;  %v460_v15 = vld [vmem:[#allocation7 + $0x78] sm:$0xff] }
  0x1b   :  { %v157_v31 = vsub.f32 %v1030_v16, %v156_v24  ;;  %302 = vmatpush.msra.mxu3 %v1014_v5  ;;  %v163_v38 = vsub.f32 %v1036_v18, %v162_v26  ;;  %v169_v40 = vsub.f32 %v1039_v19, %v168_v27  ;;  %v180_v41 = vand.u32 4294901760, %v1054_v28 }
  0x1c   :  { %v146_v36 = vand.u32 4294901760, %v145_v29  ;;  %v152_v37 = vand.u32 4294901760, %v151_v30  ;;  %108 = vmatpush.msra.mxu0 %v1016_v9  ;;  %251 = vmatpush.msra.mxu2 %v1030_v16  ;;  %v1086_v44 = vand.u32 4294901760, %v85_v34  ;;  %v1089_v45 = vsub.f32 %v86_v21, %v1067_v32  ;;  %v1146_v29 = vld [vmem:[#allocation2] sm:$0xff] }
  0x1d   :  { %304 = vmatpush.msra.mxu3 %v1016_v9  ;;  %v158_v43 = vand.u32 4294901760, %v157_v31  ;;  %v1091_v46 = vand.u32 4294901760, %v84_v35  ;;  %v186_v48 = vand.u32 4294901760, %v1071_v33  ;;  %v164_v49 = vand.u32 4294901760, %v163_v38 }
  0x1e   :  { %147 = vmatpush.msra.mxu1 %v146_v36  ;;  %110 = vmatpush.msra.mxu0 %v1018_v10  ;;  %v175_v50 = vsub.f32 %v1048_v25, %v174_v39  ;;  %v1101_v51 = vsub.f32 %v85_v34, %v1086_v44  ;;  %v1103_v52 = vand.u32 4294901760, %v83_v42  ;;  %v1105_v54 = vand.u32 4294901760, %v82_v47 }
  0x1f   :  { %254 = vmatpush.msra.mxu2 %v1036_v18  ;;  %306 = vmatpush.msra.mxu3 %v1018_v10  ;;  %v170_v55 = vand.u32 4294901760, %v169_v40  ;;  %v181_v56 = vsub.f32 %v1054_v28, %v180_v41  ;;  %v192_v57 = vand.u32 4294901760, %v1089_v45  ;;  %v1115_v58 = vsub.f32 %v84_v35, %v1091_v46  ;;  %v455_v18 = vld [vmem:[#allocation7 + $0x50] sm:$0xff] }
  0x20   :  { %153 = vmatpush.msra.mxu1 %v152_v37  ;;  %112 = vmatpush.msra.mxu0 %v1020_v11  ;;  %v187_v59 = vsub.f32 %v1071_v33, %v186_v48  ;;  %v1120_v60 = vand.u32 4294901760, %v81_v53  ;;  %v176_v62 = vand.u32 4294901760, %v175_v50  ;;  %v198_v63 = vand.u32 4294901760, %v1101_v51 }
  0x21   :  { %257 = vmatpush.msra.mxu2 %v1039_v19  ;;  %308 = vmatpush.msra.mxu3 %v1020_v11  ;;  %v1127_v0 = vsub.f32 %v83_v42, %v1103_v52  ;;  %v1130_v1 = vsub.f32 %v82_v47, %v1105_v54  ;;  %v182_v6 = vand.u32 4294901760, %v181_v56  ;;  %v193_v7 = vsub.f32 %v1089_v45, %v192_v57  ;;  %v453_v19 = vld [vmem:[#allocation7 + $0x40] sm:$0xff] }
  0x22   :  { %159 = vmatpush.msra.mxu1 %v158_v43  ;;  %114 = vmatpush.msra.mxu0 %v1032_v17  ;;  %v204_v8 = vand.u32 4294901760, %v1115_v58  ;;  %v1139_v12 = vand.u32 4294901760, %v80_v61  ;;  %v188_v13 = vand.u32 4294901760, %v187_v59  ;;  %v1142_v21 = vsub.f32 %v81_v53, %v1120_v60 }
  0x23   :  { %260 = vmatpush.msra.mxu2 %v1048_v25  ;;  %310 = vmatpush.msra.mxu3 %v1032_v17  ;;  %v199_v30 = vsub.f32 %v1101_v51, %v198_v63  ;;  %v210_v31 = vand.u32 4294901760, %v1127_v0  ;;  %v1153_v34 = vand.u32 4294901760, %v79_v2  ;;  %v1156_v35 = vand.u32 4294901760, %v1146_v29 }
  0x24   :  { %165 = vmatpush.msra.mxu1 %v164_v49  ;;  %116 = vmatpush.msra.mxu0 %v1041_v20  ;;  %v216_v36 = vand.u32 4294901760, %v1130_v1  ;;  %v194_v37 = vand.u32 4294901760, %v193_v7  ;;  %v205_v38 = vsub.f32 %v1115_v58, %v204_v8  ;;  %v1166_v40 = vsub.f32 %v80_v61, %v1139_v12 }
  0x25   :  { %263 = vmatpush.msra.mxu2 %v1054_v28  ;;  %312 = vmatpush.msra.mxu3 %v1041_v20  ;;  %v134_v42 = vsub.f32 %v1146_v29, %v1156_v35  ;;  %v200_v43 = vand.u32 4294901760, %v199_v30  ;;  %v211_v47 = vsub.f32 %v1127_v0, %v210_v31  ;;  %v222_v49 = vand.u32 4294901760, %v1142_v21 }
  0x26   :  { %171 = vmatpush.msra.mxu1 %v170_v55  ;;  %118 = vmatpush.msra.mxu0 %v1067_v32  ;;  %v1178_v50 = vsub.f32 %v79_v2, %v1153_v34  ;;  %v206_v53 = vand.u32 4294901760, %v205_v38  ;;  %v217_v55 = vsub.f32 %v1130_v1, %v216_v36  ;;  %v228_v56 = vand.u32 4294901760, %v1166_v40  ;;  %v1209_v38 = vld [vmem:[#allocation8] sm:$0xff] }
  0x27   :  { %266 = vmatpush.msra.mxu2 %v1071_v33  ;;  %314 = vmatpush.msra.mxu3 %v1067_v32  ;;  %v135_v59 = vand.u32 4294901760, %v134_v42  ;;  %v212_v61 = vand.u32 4294901760, %v211_v47  ;;  %v452_v33 = vld [vmem:[#allocation7 + $0x38] sm:$0xff] }
  0x28   :  { %177 = vmatpush.msra.mxu1 %v176_v62  ;;  %120 = vmatpush.msra.mxu0 %v1086_v44  ;;  %v223_v62 = vsub.f32 %v1142_v21, %v222_v49  ;;  %v234_v2 = vand.u32 4294901760, %v1178_v50  ;;  %v229_v7 = vsub.f32 %v1166_v40, %v228_v56 }
  0x29   :  { %269 = vmatpush.msra.mxu2 %v1089_v45  ;;  %316 = vmatpush.msra.mxu3 %v1086_v44  ;;  %v1303_v45 = vand.u32 4294901760, %v452_v33 }
  0x2a   :  { %183 = vmatpush.msra.mxu1 %v182_v6  ;;  %122 = vmatpush.msra.mxu0 %v1091_v46  ;;  %v218_v6 = vand.u32 4294901760, %v217_v55  ;;  %v224_v30 = vand.u32 4294901760, %v223_v62  ;;  %v1235_v62 = vand.u32 4294901760, %v455_v18 }
  0x2b   :  { %272 = vmatpush.msra.mxu2 %v1101_v51  ;;  %318 = vmatpush.msra.mxu3 %v1091_v46  ;;  %v1318_v51 = vsub.f32 %v452_v33, %v1303_v45 }
  0x2c   :  { %189 = vmatpush.msra.mxu1 %v188_v13  ;;  %124 = vmatpush.msra.mxu0 %v1103_v52  ;;  %v136_v13 = vsub.f32 %v134_v42, %v135_v59 }
  0x2d   :  { %275 = vmatpush.msra.mxu2 %v1115_v58  ;;  %320 = vmatpush.msra.mxu3 %v1103_v52 }
  0x2e   :  { %195 = vmatpush.msra.mxu1 %v194_v37  ;;  %126 = vmatpush.msra.mxu0 %v1105_v54  ;;  %v235_v37 = vsub.f32 %v1178_v50, %v234_v2  ;;  %v137_v47 = vand.u32 4294901760, %v136_v13 }
  0x2f   :  { %278 = vmatpush.msra.mxu2 %v1127_v0  ;;  %322 = vmatpush.msra.mxu3 %v1105_v54  ;;  %v446_v0 = vld [vmem:[#allocation7 + $0x8] sm:$0xff] }
  0x30   :  { %201 = vmatpush.msra.mxu1 %v200_v43  ;;  %128 = vmatpush.msra.mxu0 %v1120_v60  ;;  %v230_v43 = vand.u32 4294901760, %v229_v7  ;;  %v236_v55 = vand.u32 4294901760, %v235_v37 }
  0x31   :  { %281 = vmatpush.msra.mxu2 %v1130_v1  ;;  %324 = vmatpush.msra.mxu3 %v1120_v60  ;;  %v445_v1 = vld [vmem:[#allocation7] sm:$0xff] }
  0x32   :  { %207 = vmatpush.msra.mxu1 %v206_v53  ;;  %130 = vmatpush.msra.mxu0 %v1139_v12  ;;  %v95_v53 = vperm.slane %v1209_v38, 0 }
  0x33   :  { %284 = vmatpush.msra.mxu2 %v1142_v21  ;;  %326 = vmatpush.msra.mxu3 %v1139_v12 }
  0x34   :  { %213 = vmatpush.msra.mxu1 %v212_v61  ;;  %132 = vmatpush.msra.mxu0 %v1153_v34  ;;  %v96_v14 = vmul.f32 %v95_v53, %v1146_v29  ;;  %v1224_v29 = vand.u32 4294901760, %v460_v15  ;;  %v1269_v53 = vsub.f32 %v455_v18, %v1235_v62  ;;  %v449_v18 = vld [vmem:[#allocation7 + $0x20] sm:$0xff] }
  0x35   :  { %287 = vmatpush.msra.mxu2 %v1166_v40  ;;  %328 = vmatpush.msra.mxu3 %v1153_v34 }
  0x36   :  { %339 = vmatpush.msrb.mxu0 %v144_v22  ;;  %219 = vmatpush.msra.mxu1 %v218_v6  ;;  %v459_v22 = vld [vmem:[#allocation7 + $0x70] sm:$0xff] }
  0x37   :  { %290 = vmatpush.msra.mxu2 %v1178_v50  ;;  %332 = vmatmul.f32.vlgmr.msra.gmra.mxu3 %v135_v59  ;;  %v1226_v16 = vand.u32 4294901760, %v459_v22  ;;  %v456_v59 = vld [vmem:[#allocation7 + $0x58] sm:$0xff] }
  0x38   :  { %343 = vmatpush.msrb.mxu0 %v150_v23  ;;  %225 = vmatpush.msra.mxu1 %v224_v30  ;;  %v458_v23 = vld [vmem:[#allocation7 + $0x68] sm:$0xff]  ;;  %v1233_v61 = vand.u32 4294901760, %v456_v59 }
  0x39   :  { %293 = vmatmul.f32.vlgmr.msra.gmra.mxu2 %v134_v42  ;;  %138 = vmatmul.f32.vlgmr.msra.gmra.mxu0 %v137_v47  ;;  %v457_v42 = vld [vmem:[#allocation7 + $0x60] sm:$0xff]  ;;  %v1244_v6 = vsub.f32 %v459_v22, %v1226_v16  ;;  %v450_v22 = vld [vmem:[#allocation7 + $0x28] sm:$0xff] }
  0x3a   :  { %347 = vmatpush.msrb.mxu0 %v156_v24  ;;  %231 = vmatpush.msra.mxu1 %v230_v43  ;;  %v1228_v24 = vand.u32 4294901760, %v458_v23  ;;  %v1264_v43 = vand.u32 4294901760, %v453_v19 }
  0x3b   :  { %97 = vadd.xlane.f32.xlu0 %v96_v14  ;;  %468 = vmatpush.msrb.mxu2 %v1224_v29 }
  0x3c   :  { %351 = vmatpush.msrb.mxu0 %v162_v26  ;;  %237 = vmatpush.msra.mxu1 %v236_v55  ;;  %v1231_v26 = vand.u32 4294901760, %v457_v42  ;;  %v1247_v7 = vsub.f32 %v458_v23, %v1228_v24 }
  0x3d   :  { %239 = vmatmul.f32.vlgmr.msra.gmra.mxu1 %v1156_v35  ;;  %470 = vmatpush.msrb.mxu2 %v1226_v16 }
  0x3e   :  { %406 = vmatpush.msrb.mxu1 %v1010_v3  ;;  %355 = vmatpush.msrb.mxu0 %v168_v27  ;;  %v454_v3 = vld [vmem:[#allocation7 + $0x48] sm:$0xff]  ;;  %v1241_v27 = vsub.f32 %v460_v15, %v1224_v29  ;;  %v1252_v30 = vsub.f32 %v457_v42, %v1231_v26  ;;  %v522_v37 = vand.u32 4294901760, %v1247_v7  ;;  %v1292_v15 = vsub.f32 %v453_v19, %v1264_v43 }
  0x3f   :  { %v1249_v13 = vand.u32 4294901760, %v454_v3  ;;  %472 = vmatpush.msrb.mxu2 %v1228_v24 }
  0x40   :  { %408 = vmatpush.msrb.mxu1 %v1012_v4  ;;  %359 = vmatpush.msrb.mxu0 %v174_v39  ;;  %v1256_v4 = vsub.f32 %v456_v59, %v1233_v61  ;;  %v510_v25 = vand.u32 4294901760, %v1241_v27  ;;  %v516_v39 = vand.u32 4294901760, %v1244_v6  ;;  %v528_v47 = vand.u32 4294901760, %v1252_v30 }
  0x41   :  { %v523_v55 = vsub.f32 %v1247_v7, %v522_v37  ;;  %v540_v59 = vand.u32 4294901760, %v1269_v53  ;;  %474 = vmatpush.msrb.mxu2 %v1231_v26 }
  0x42   :  { %410 = vmatpush.msrb.mxu1 %v1014_v5  ;;  %363 = vmatpush.msrb.mxu0 %v180_v41  ;;  %v511_v5 = vsub.f32 %v1241_v27, %v510_v25  ;;  %v517_v28 = vsub.f32 %v1244_v6, %v516_v39  ;;  %v1281_v41 = vsub.f32 %v454_v3, %v1249_v13 }
  0x43   :  { %v529_v42 = vsub.f32 %v1252_v30, %v528_v47  ;;  %v524_v3 = vand.u32 4294901760, %v523_v55  ;;  %476 = vmatpush.msrb.mxu2 %v1233_v61  ;;  %v541_v55 = vsub.f32 %v1269_v53, %v540_v59 }
  0x44   :  { %412 = vmatpush.msrb.mxu1 %v1016_v9  ;;  %367 = vmatpush.msrb.mxu0 %v186_v48  ;;  %v534_v9 = vand.u32 4294901760, %v1256_v4  ;;  %v451_v48 = vld [vmem:[#allocation7 + $0x30] sm:$0xff]  ;;  %v512_v14 = vand.u32 4294901760, %v511_v5  ;;  %v518_v23 = vand.u32 4294901760, %v517_v28  ;;  %v1311_v5 = vand.u32 4294901760, %v450_v22 }
  0x45   :  { %v530_v28 = vand.u32 4294901760, %v529_v42  ;;  %478 = vmatpush.msrb.mxu2 %v1235_v62 }
  0x46   :  { %414 = vmatpush.msrb.mxu1 %v1018_v10  ;;  %371 = vmatpush.msrb.mxu0 %v192_v57  ;;  %v546_v10 = vand.u32 4294901760, %v1281_v41  ;;  %v1305_v57 = vand.u32 4294901760, %v451_v48  ;;  %v535_v19 = vsub.f32 %v1256_v4, %v534_v9 }
  0x47   :  { %513 = vmatpush.msrb.mxu3 %v512_v14  ;;  %480 = vmatpush.msrb.mxu2 %v1249_v13 }
  0x48   :  { %416 = vmatpush.msrb.mxu1 %v1020_v11  ;;  %375 = vmatpush.msrb.mxu0 %v198_v63  ;;  %v552_v11 = vand.u32 4294901760, %v1292_v15  ;;  %v448_v63 = vld [vmem:[#allocation7 + $0x18] sm:$0xff]  ;;  %v1325_v14 = vsub.f32 %v451_v48, %v1305_v57  ;;  %v547_v58 = vsub.f32 %v1281_v41, %v546_v10  ;;  %v536_v33 = vand.u32 4294901760, %v535_v19 }
  0x49   :  { %519 = vmatpush.msrb.mxu3 %v518_v23  ;;  %v558_v23 = vand.u32 4294901760, %v1318_v51  ;;  %v1338_v48 = vsub.f32 %v450_v22, %v1311_v5  ;;  %v1340_v42 = vand.u32 4294901760, %v448_v63  ;;  %482 = vmatpush.msrb.mxu2 %v1264_v43 }
  0x4a   :  { %418 = vmatpush.msrb.mxu1 %v1032_v17  ;;  %379 = vmatpush.msrb.mxu0 %v204_v8  ;;  %v1327_v17 = vand.u32 4294901760, %v449_v18  ;;  %v447_v8 = vld [vmem:[#allocation7 + $0x10] sm:$0xff] }
  0x4b   :  { %525 = vmatpush.msrb.mxu3 %v524_v3  ;;  %v564_v3 = vand.u32 4294901760, %v1325_v14  ;;  %v1353_v19 = vand.u32 4294901760, %v447_v8  ;;  %484 = vmatpush.msrb.mxu2 %v1303_v45 }
  0x4c   :  { %420 = vmatpush.msrb.mxu1 %v1041_v20  ;;  %383 = vmatpush.msrb.mxu0 %v210_v31  ;;  %v553_v20 = vsub.f32 %v1292_v15, %v552_v11  ;;  %v542_v31 = vand.u32 4294901760, %v541_v55  ;;  %v1351_v22 = vsub.f32 %v449_v18, %v1327_v17  ;;  %v1364_v18 = vsub.f32 %v448_v63, %v1340_v42 }
  0x4d   :  { %531 = vmatpush.msrb.mxu3 %v530_v28  ;;  %v570_v28 = vand.u32 4294901760, %v1338_v48  ;;  %v1366_v55 = vand.u32 4294901760, %v446_v0  ;;  %v565_v21 = vsub.f32 %v1325_v14, %v564_v3  ;;  %486 = vmatpush.msrb.mxu2 %v1305_v57  ;;  %v1377_v63 = vsub.f32 %v447_v8, %v1353_v19 }
  0x4e   :  { %422 = vmatpush.msrb.mxu1 %v1067_v32  ;;  %387 = vmatpush.msrb.mxu0 %v216_v36  ;;  %v548_v32 = vand.u32 4294901760, %v547_v58  ;;  %v559_v36 = vsub.f32 %v1318_v51, %v558_v23  ;;  %v1379_v58 = vand.u32 4294901760, %v445_v1 }
  0x4f   :  { %537 = vmatpush.msrb.mxu3 %v536_v33  ;;  %v571_v40 = vsub.f32 %v1338_v48, %v570_v28  ;;  %v1390_v8 = vsub.f32 %v446_v0, %v1366_v55  ;;  %488 = vmatpush.msrb.mxu2 %v1311_v5 }
  0x50   :  { %424 = vmatpush.msrb.mxu1 %v1086_v44  ;;  %391 = vmatpush.msrb.mxu0 %v222_v49  ;;  %v554_v44 = vand.u32 4294901760, %v553_v20  ;;  %v576_v49 = vand.u32 4294901760, %v1351_v22  ;;  %v1400_v33 = vsub.f32 %v445_v1, %v1379_v58 }
  0x51   :  { %543 = vmatpush.msrb.mxu3 %v542_v31  ;;  %v594_v0 = vand.u32 4294901760, %v1390_v8  ;;  %490 = vmatpush.msrb.mxu2 %v1327_v17 }
  0x52   :  { %426 = vmatpush.msrb.mxu1 %v1091_v46  ;;  %395 = vmatpush.msrb.mxu0 %v228_v56  ;;  %v560_v46 = vand.u32 4294901760, %v559_v36  ;;  %v582_v56 = vand.u32 4294901760, %v1364_v18  ;;  %v577_v50 = vsub.f32 %v1351_v22, %v576_v49 }
  0x53   :  { %549 = vmatpush.msrb.mxu3 %v548_v32  ;;  %v600_v32 = vand.u32 4294901760, %v1400_v33  ;;  %492 = vmatpush.msrb.mxu2 %v1340_v42  ;;  %v595_v1 = vsub.f32 %v1390_v8, %v594_v0 }
  0x54   :  { %428 = vmatpush.msrb.mxu1 %v1103_v52  ;;  %399 = vmatpush.msrb.mxu0 %v234_v2  ;;  %v566_v52 = vand.u32 4294901760, %v565_v21  ;;  %v588_v2 = vand.u32 4294901760, %v1377_v63  ;;  %v583_v20 = vsub.f32 %v1364_v18, %v582_v56  ;;  %v578_v31 = vand.u32 4294901760, %v577_v50 }
  0x55   :  { %401 = vmatmul.f32.vlgmr.msrb.gmra.mxu0 %v1156_v35  ;;  %555 = vmatpush.msrb.mxu3 %v554_v44 }
  0x56   :  { %430 = vmatpush.msrb.mxu1 %v1105_v54  ;;  %611 = vmatpush.msra.mxu0 %v1241_v27  ;;  %v572_v54 = vand.u32 4294901760, %v571_v40 }
  0x57   :  { %561 = vmatpush.msrb.mxu3 %v560_v46  ;;  %494 = vmatpush.msrb.mxu2 %v1353_v19 }
  0x58   :  { %432 = vmatpush.msrb.mxu1 %v1120_v60  ;;  %614 = vmatpush.msra.mxu0 %v1244_v6  ;;  %v589_v60 = vsub.f32 %v1377_v63, %v588_v2 }
  0x59   :  { %567 = vmatpush.msrb.mxu3 %v566_v52  ;;  %496 = vmatpush.msrb.mxu2 %v1366_v55 }
  0x5a   :  { %434 = vmatpush.msrb.mxu1 %v1139_v12  ;;  %617 = vmatpush.msra.mxu0 %v1247_v7  ;;  %v584_v12 = vand.u32 4294901760, %v583_v20  ;;  %v590_v36 = vand.u32 4294901760, %v589_v60 }
  0x5b   :  { %573 = vmatpush.msrb.mxu3 %v572_v54  ;;  %498 = vmatpush.msrb.mxu2 %v1379_v58 }
  0x5c   :  { %436 = vmatpush.msrb.mxu1 %v1153_v34  ;;  %620 = vmatpush.msra.mxu0 %v1252_v30  ;;  %v601_v34 = vsub.f32 %v1400_v33, %v600_v32 }
  0x5d   :  { %438 = vmatmul.f32.vlgmr.msrb.gmra.mxu1 %v1156_v35  ;;  %579 = vmatpush.msrb.mxu3 %v578_v31  ;;  %v596_v35 = vand.u32 4294901760, %v595_v1 }
  0x5e   :  { %664 = vmatpush.msra.mxu1 %v1224_v29  ;;  %623 = vmatpush.msra.mxu0 %v1256_v4  ;;  %v602_v44 = vand.u32 4294901760, %v601_v34 }
  0x5f   :  { %585 = vmatpush.msrb.mxu3 %v584_v12  ;;  %705 = vmatpush.msra.mxu2 %v510_v25 }
  0x60   :  { %666 = vmatpush.msra.mxu1 %v1226_v16  ;;  %626 = vmatpush.msra.mxu0 %v1269_v53  ;;  %v461_v53 = vperm.slane %v1209_v38, 3 }
  0x61   :  { %591 = vmatpush.msrb.mxu3 %v590_v36  ;;  %709 = vmatpush.msra.mxu2 %v516_v39  ;;  %v442_v39 = vperm.slane %v1209_v38, 2 }
  0x62   :  { %668 = vmatpush.msra.mxu1 %v1228_v24  ;;  %629 = vmatpush.msra.mxu0 %v1281_v41 }
  0x63   :  { %597 = vmatpush.msrb.mxu3 %v596_v35  ;;  %713 = vmatpush.msra.mxu2 %v522_v37 }
  0x64   :  { %670 = vmatpush.msra.mxu1 %v1231_v26  ;;  %632 = vmatpush.msra.mxu0 %v1292_v15 }
  0x65   :  { %603 = vmatpush.msrb.mxu3 %v602_v44  ;;  %717 = vmatpush.msra.mxu2 %v528_v47 }
  0x66   :  { %672 = vmatpush.msra.mxu1 %v1233_v61  ;;  %635 = vmatpush.msra.mxu0 %v1318_v51 }
  0x67   :  { %772 = vmatpush.msra.mxu3 %v1224_v29  ;;  %721 = vmatpush.msra.mxu2 %v534_v9  ;;  %v99_v29 = vperm.slane %v1209_v38, 1 }
  0x68   :  { %674 = vmatpush.msra.mxu1 %v1235_v62  ;;  %638 = vmatpush.msra.mxu0 %v1325_v14 }
  0x69   :  { %774 = vmatpush.msra.mxu3 %v1226_v16  ;;  %725 = vmatpush.msra.mxu2 %v540_v59 }
  0x6a   :  { %676 = vmatpush.msra.mxu1 %v1249_v13  ;;  %641 = vmatpush.msra.mxu0 %v1338_v48 }
  0x6b   :  { %776 = vmatpush.msra.mxu3 %v1228_v24  ;;  %729 = vmatpush.msra.mxu2 %v546_v10 }
  0x6c   :  { %678 = vmatpush.msra.mxu1 %v1264_v43  ;;  %644 = vmatpush.msra.mxu0 %v1351_v22 }
  0x6d   :  { %778 = vmatpush.msra.mxu3 %v1231_v26  ;;  %733 = vmatpush.msra.mxu2 %v552_v11 }
  0x6e   :  { %680 = vmatpush.msra.mxu1 %v1303_v45  ;;  %647 = vmatpush.msra.mxu0 %v1364_v18 }
  0x6f   :  { %780 = vmatpush.msra.mxu3 %v1233_v61  ;;  %737 = vmatpush.msra.mxu2 %v558_v23 }
  0x70   :  { %682 = vmatpush.msra.mxu1 %v1305_v57  ;;  %650 = vmatpush.msra.mxu0 %v1377_v63 }
  0x71   :  { %782 = vmatpush.msra.mxu3 %v1235_v62  ;;  %741 = vmatpush.msra.mxu2 %v564_v3 }
  0x72   :  { %684 = vmatpush.msra.mxu1 %v1311_v5  ;;  %653 = vmatpush.msra.mxu0 %v1390_v8 }
  0x73   :  { %784 = vmatpush.msra.mxu3 %v1249_v13  ;;  %745 = vmatpush.msra.mxu2 %v570_v28 }
  0x74   :  { %686 = vmatpush.msra.mxu1 %v1327_v17  ;;  %656 = vmatpush.msra.mxu0 %v1400_v33 }
  0x75   :  { %786 = vmatpush.msra.mxu3 %v1264_v43  ;;  %749 = vmatpush.msra.mxu2 %v576_v49 }
  0x76   :  { %688 = vmatpush.msra.mxu1 %v1340_v42 }
  0x77   :  { %788 = vmatpush.msra.mxu3 %v1303_v45  ;;  %753 = vmatpush.msra.mxu2 %v582_v56 }
  0x78   :  { %690 = vmatpush.msra.mxu1 %v1353_v19 }
  0x79   :  { %790 = vmatpush.msra.mxu3 %v1305_v57  ;;  %757 = vmatpush.msra.mxu2 %v588_v2 }
  0x7a   :  { %692 = vmatpush.msra.mxu1 %v1366_v55 }
  0x7b   :  { %792 = vmatpush.msra.mxu3 %v1311_v5  ;;  %761 = vmatpush.msra.mxu2 %v594_v0  ;;  %v465_v5 = vperm.slane %v1209_v38, 4 }
  0x7c   :  { %694 = vmatpush.msra.mxu1 %v1379_v58 }
  0x7d   :  { %794 = vmatpush.msra.mxu3 %v1327_v17  ;;  %765 = vmatpush.msra.mxu2 %v600_v32 }
  0x7f   :  { %796 = vmatpush.msra.mxu3 %v1340_v42 }
  0x81   :  { %798 = vmatpush.msra.mxu3 %v1353_v19 }
  0x83   :  { %800 = vmatpush.msra.mxu3 %v1366_v55  ;;  %v808_v55 = vperm.slane %v1209_v38, 5 }
  0x85   :  { %802 = vmatpush.msra.mxu3 %v1379_v58 }
  0xae   :  { %v98_v16 = vpop.xlane.xlu0 %97 }
  0xaf   :  { %v100_v24 = vmul.f32 %v99_v29, %v98_v16 }
  0xb6   :  { %v139_v26 = vpop.f32.mrf.mxu0 }
  0xb7   :  { %v140_v61 = vadd.f32 %v139_v26, %v100_v24 }
  0xba   :  { %v240_v62 = vpop.f32.mrf.mxu1  ;;  %v333_v13 = vpop.f32.mrf.mxu3 }
  0xbb   :  { %v241_v27 = vadd.f32 %v240_v62, %v140_v61 }
  0xbc   :  { %v294_v6 = vpop.f32.mrf.mxu2 }
  0xbd   :  { %v295_v7 = vadd.f32 %v294_v6, %v241_v27 }
  0xbf   :  { %v334_v30 = vadd.f32 %v333_v13, %v295_v7 }
  0xd2   :  { %v402_v4 = vpop.f32.mrf.mxu0 }
  0xd3   :  { %v403_v25 = vadd.f32 %v402_v4, %v334_v30 }
  0xda   :  { %v439_v37 = vpop.f32.mrf.mxu1 }
  0xdb   :  { %v440_v43 = vadd.f32 %v439_v37, %v403_v25 }
  0xdd   :  { %v443_v47 = vadd.f32 %v442_v39, %v440_v43 }
  0xdf   :  { %v444_v41 = vmax.f32 %v443_v47, 0.0 }
  0xe1   :  { %v499_v9 = vand.u32 4294901760, %v444_v41  ;;  %v462_v15 = vmul.f32 %v461_v53, %v444_v41 }
  0xe3   :  { %605 = vmatmul.f32.vlgmr.msrb.gmra.mxu3 %v499_v9  ;;  %463 = vadd.xlane.f32.xlu0 %v462_v15  ;;  %v500_v59 = vsub.f32 %v444_v41, %v499_v9 }
  0xe5   :  { %659 = vmatmul.f32.vlgmr.msra.gmra.mxu0 %v500_v59  ;;  %v501_v10 = vand.u32 4294901760, %v500_v59 }
  0xe7   :  { %698 = vmatmul.f32.vlgmr.msra.gmra.mxu1 %v501_v10  ;;  %v502_v45 = vsub.f32 %v500_v59, %v501_v10 }
  0xe9   :  { %v503_v57 = vand.u32 4294901760, %v502_v45 }
  0xeb   :  { %504 = vmatmul.f32.vlgmr.msrb.gmra.mxu2 %v503_v57  ;;  %804 = vmatmul.f32.vlgmr.msra.gmra.mxu3 %v499_v9 }
  0xf3   :  { %767 = vmatmul.f32.vlgmr.msra.gmra.mxu2 %v499_v9 }
 0x156   :  { %v464_v11 = vpop.xlane.xlu0 %463 }
 0x157   :  { %v466_v51 = vmul.f32 %v465_v5, %v464_v11 }
 0x162   :  { %v660_v42 = vpop.f32.mrf.mxu0 }
 0x164   :  { %v699_v22 = vpop.f32.mrf.mxu1 }
 0x166   :  { %v606_v14 = vpop.f32.mrf.mxu3 }
 0x16e   :  { %v505_v17 = vpop.f32.mrf.mxu2  ;;  %v805_v21 = vpop.f32.mrf.mxu3 }
 0x16f   :  { %v506_v23 = vadd.f32 %v505_v17, %v466_v51 }
 0x171   :  { %v607_v48 = vadd.f32 %v606_v14, %v506_v23 }
 0x173   :  { %v661_v3 = vadd.f32 %v660_v42, %v607_v48 }
 0x175   :  { %v700_v19 = vadd.f32 %v699_v22, %v661_v3 }
 0x176   :  { %v768_v28 = vpop.f32.mrf.mxu2 }
 0x177   :  { %v769_v18 = vadd.f32 %v768_v28, %v700_v19 }
 0x179   :  { %v806_v49 = vadd.f32 %v805_v21, %v769_v18 }
 0x17b   :  { %v809_v63 = vadd.f32 %v808_v55, %v806_v49 }
 0x17d   :  { %v810_v58 = vmax.f32 %v809_v63, 0.0 }
 0x17f   :  { %811 = vst [vmem:[#allocation10] sm:$0xff] %v810_v58 }
 0x180   :  { %822 = dma.vmem_to_hbm [thread:$0]  %s818_s3, 128, %s820_s11, [#allocation4]  }
 0x181   :  { %964 = dma.done.wait [#allocation4], 128  }
 0x182   :  { %965 = vsyncadd [#allocation4], 4294967168 }
 0x183   :  { %827 = vsyncpa [#allocation3], 1 }
 0x184   :  { %828 = vsyncpa [#allocation6], 1 }
 0x185   :  { %829 = vsyncpa [#allocation9], 1 }
 0x186   :  { %830 = vsyncpa [#allocation4], 1 }

</bundles_post_ra>
